<compile_context>
chip_gen: v7x
topology: tpu7x:2x2x1
jax: 0.10.0
libtpu: 0.0.40
codegen_flags: <defaults>
</compile_context>

<pallas_src>
import functools

import jax
import jax.numpy as jnp
import numpy as np
from jax.experimental import pallas as pl
from jax.experimental.pallas import tpu as pltpu


def _spatial_nl_kernel(x_ref, w3_ref, wz_ref,          # inputs
                       o_ref, sum_ref, ssq_ref,        # outputs
                       p_ref, g_ref, y_ref,            # VMEM scratch
                       *, block_j, approx_recip):
    mm_dtype = w3_ref.dtype                             # matmul input dtype (bf16/f32)
    _, D = x_ref.shape
    P = wz_ref.shape[1]
    num_j = D // block_j

    # ---- fused t/p/g projection: ONE MXU matmul with M = 3P -----------------
    x = x_ref[...].astype(mm_dtype)                     # (C_in, D)
    tpg = jax.lax.dot_general(                          # (3P, D), f32 accumulation
        w3_ref[...], x,
        dimension_numbers=(((1,), (0,)), ((), ())),
        preferred_element_type=jnp.float32)

    t = tpg[:P].astype(mm_dtype)                        # (P, D), reused for every j-tile
    p_ref[...] = tpg[P:2 * P].astype(mm_dtype)          # (P, D)
    g_ref[...] = tpg[2 * P:].astype(mm_dtype)           # (P, D)

    y_ref[...] = jnp.zeros_like(y_ref)                  # (D, P) f32 accumulator

    # ---- attention, tiled over the contracted j (column) axis ---------------
    # softmax is over the row axis (torch Softmax(dim=1)), so each full column
    # tile has exact statistics; no cross-tile rescaling is required.
    def j_step(j0):
        p_blk = p_ref[:, pl.ds(j0, block_j)]            # (P, bj)
        g_blk = g_ref[:, pl.ds(j0, block_j)]            # (P, bj)
        # scores = t^T @ p  (contract the channel dim; no explicit transpose)
        s = jax.lax.dot_general(
            t, p_blk, dimension_numbers=(((0,), (0,)), ((), ())),
            preferred_element_type=jnp.float32)         # (D, bj) f32
        # softmax over rows (axis=0) == torch Softmax(dim=1); kept in f32.
        s = s - jnp.max(s, axis=0, keepdims=True)
        e = jnp.exp(s)
        denom = jnp.sum(e, axis=0, keepdims=True)       # (1, bj)
        att = e * pl.reciprocal(denom, approx=approx_recip)
        # y[i, q] += sum_j att[i, j] * g[q, j]    (== bmm(att, g^T))
        y_ref[...] += jax.lax.dot_general(
            att.astype(mm_dtype), g_blk,
            dimension_numbers=(((1,), (1,)), ((), ())),
            preferred_element_type=jnp.float32)         # (D, P)

    if num_j == 1:
        j_step(0)
    else:
        @pl.loop(0, num_j)
        def _(jb):
            j_step(pl.multiple_of(jb * block_j, block_j))

    # ---- z projection (planes -> inplanes), contracting the P axis ----------
    # NOTE: for production shapes with P < 128, the algebraic reorder
    # gz = Wz @ g per j-tile, z += gz_blk @ att_blk^T keeps the MXU N-dim at D.
    z = jax.lax.dot_general(
        wz_ref[...], y_ref[...].astype(mm_dtype),
        dimension_numbers=(((1,), (1,)), ((), ())),
        preferred_element_type=jnp.float32)             # (C_in, D)

    o_ref[...] = z.astype(o_ref.dtype)
    # per-(batch, channel) partial statistics for the BatchNorm epilogue
    sum_ref[...] = jnp.sum(z, axis=1, keepdims=True)
    ssq_ref[...] = jnp.sum(z * z, axis=1, keepdims=True)


def _pick_block_j(D, max_block_j=512):
    """Largest 128-multiple divisor of D that is <= max_block_j (else D)."""
    if D <= max_block_j:
        return D
    for bj in range(max_block_j, 0, -128):
        if D % bj == 0:
            return bj
    # TODO(synk): pad/mask the j axis for D that has no 128-multiple divisor.
    return D


def spatial_nl_pallas(x, wt, wp, wg, wz, *, use_scale=False,
                      matmul_dtype=jnp.bfloat16, block_j=None):
    B, C_in, D = x.shape
    P = wt.shape[0]

    # Fold the 1/sqrt(planes) attention scale into Wt (free; removes a DxD pass).
    if use_scale:
        wt = wt / jnp.float32(P) ** 0.5

    # Fuse the three 1x1-conv projection weights into one (3P, C_in) matrix.
    w3 = jnp.concatenate([wt, wp, wg], axis=0).astype(matmul_dtype)
    wz_c = wz.astype(matmul_dtype)

    if block_j is None:
        block_j = _pick_block_j(D)
    assert D % block_j == 0, "block_j must divide D"

    # Scoped-VMEM budget: sized from the actual tiles instead of the default.
    mm_b = jnp.dtype(matmul_dtype).itemsize
    x_b = jnp.dtype(x.dtype).itemsize
    est = (2 * C_in * D * x_b            # x tile (double-buffered)
           + 2 * C_in * D * x_b          # z output tile (double-buffered)
           + 2 * 4 * P * C_in * mm_b     # w3 + wz (double-buffered)
           + 2 * P * D * mm_b            # p/g scratch
           + D * P * 4                   # y accumulator (f32)
           + 3 * P * D * 4               # fused projection value (f32)
           + 4 * D * block_j * 4         # score/softmax temporaries (f32)
           + 2 * C_in * D * 4)           # z value + headroom
    vmem_limit = int(min(max(2 * est, 32 * 1024 * 1024), 64 * 1024 * 1024))

    kernel = functools.partial(
        _spatial_nl_kernel,
        block_j=block_j,
        approx_recip=(matmul_dtype != jnp.float32))

    z, zsum, zssq = pl.pallas_call(
        kernel,
        out_shape=(
            jax.ShapeDtypeStruct((B, C_in, D), x.dtype),
            jax.ShapeDtypeStruct((B, C_in, 1), jnp.float32),
            jax.ShapeDtypeStruct((B, C_in, 1), jnp.float32),
        ),
        grid_spec=pltpu.PrefetchScalarGridSpec(
            num_scalar_prefetch=0,
            grid=(B,),
            in_specs=[
                pl.BlockSpec((None, C_in, D), lambda b: (b, 0, 0)),   # x (batch squeezed)
                pl.BlockSpec((3 * P, C_in), lambda b: (0, 0)),        # fused W3
                pl.BlockSpec((C_in, P), lambda b: (0, 0)),            # Wz
            ],
            out_specs=(
                pl.BlockSpec((None, C_in, D), lambda b: (b, 0, 0)),   # z
                pl.BlockSpec((None, C_in, 1), lambda b: (b, 0, 0)),   # per-batch sum
                pl.BlockSpec((None, C_in, 1), lambda b: (b, 0, 0)),   # per-batch sum-of-squares
            ),
            scratch_shapes=[
                pltpu.VMEM((P, D), matmul_dtype),   # p projection
                pltpu.VMEM((P, D), matmul_dtype),   # g projection
                pltpu.VMEM((D, P), jnp.float32),    # y accumulator
            ],
        ),
        compiler_params=pltpu.CompilerParams(
            dimension_semantics=("parallel",),
            vmem_limit_bytes=vmem_limit,
        ),
    )(x, w3, wz_c)

    # BatchNorm1d (train mode: fresh module, gamma=1, beta=0, biased variance,
    # eps=1e-5) + residual.  Cross-batch reduction uses the tiny per-batch
    # statistics emitted by the kernel; z is read exactly once here.
    eps = 1e-5
    n = B * D
    mean = jnp.sum(zsum, axis=0, keepdims=True) / n              # (1, C_in, 1)
    var = jnp.maximum(jnp.sum(zssq, axis=0, keepdims=True) / n - mean * mean, 0.0)
    return (z - mean) * jax.lax.rsqrt(var + eps) + x


def spatial_nl_reference(x, wt, wp, wg, wz, *, use_scale=False):
    """Pure-JAX (f32) reference mirroring the PyTorch forward exactly."""
    t = jnp.einsum("pc,bcd->bpd", wt, x)
    p = jnp.einsum("pc,bcd->bpd", wp, x)
    g = jnp.einsum("pc,bcd->bpd", wg, x)
    att = jnp.einsum("bpi,bpj->bij", t, p)          # bmm(t^T, p)
    if use_scale:
        att = att / jnp.float32(t.shape[1]) ** 0.5
    att = jax.nn.softmax(att, axis=1)               # torch Softmax(dim=1)
    y = jnp.einsum("bij,bpj->bip", att, g)          # bmm(att, g^T) -> (B, D, P)
    y = jnp.transpose(y, (0, 2, 1))                 # (B, P, D)
    z = jnp.einsum("cp,bpd->bcd", wz, y)
    eps = 1e-5
    mean = jnp.mean(z, axis=(0, 2), keepdims=True)
    var = jnp.mean((z - mean) ** 2, axis=(0, 2), keepdims=True)
    return (z - mean) / jnp.sqrt(var + eps) + x


if __name__ == "__main__":
    B, C_in, P, D = 2, 8, 4, 128  # batch, inplanes, planes, spatial length

    key = jax.random.PRNGKey(0)
    kx, kt, kp, kg, kz = jax.random.split(key, 5)

    x = jax.random.normal(kx, (B, C_in, D), dtype=jnp.float32)
    wt = jax.random.normal(kt, (P, C_in), dtype=jnp.float32) * (1.0 / C_in ** 0.5)
    wp = jax.random.normal(kp, (P, C_in), dtype=jnp.float32) * (1.0 / C_in ** 0.5)
    wg = jax.random.normal(kg, (P, C_in), dtype=jnp.float32) * (1.0 / C_in ** 0.5)
    wz = jax.random.normal(kz, (C_in, P), dtype=jnp.float32) * (1.0 / P ** 0.5)

    ref = jax.block_until_ready(
        spatial_nl_reference(x, wt, wp, wg, wz, use_scale=False))

    # Performance configuration: bf16 MXU inputs, f32 accumulation + f32 softmax.
    # bf16 inputs warrant a loosened tolerance against the pure-f32 reference.
    out_bf16 = jax.block_until_ready(
        spatial_nl_pallas(x, wt, wp, wg, wz, use_scale=False,
                          matmul_dtype=jnp.bfloat16))
    np.testing.assert_allclose(np.asarray(out_bf16), np.asarray(ref),
                               rtol=1e-1, atol=1e-1)

    # Strict numerical check: same kernel with f32 matmul inputs.
    out_f32 = jax.block_until_ready(
        spatial_nl_pallas(x, wt, wp, wg, wz, use_scale=False,
                          matmul_dtype=jnp.float32))
    np.testing.assert_allclose(np.asarray(out_f32), np.asarray(ref),
                               rtol=1e-4, atol=1e-4)

    # use_scale=True path (scale folded into Wt in the wrapper).
    out_scaled = jax.block_until_ready(
        spatial_nl_pallas(x, wt, wp, wg, wz, use_scale=True,
                          matmul_dtype=jnp.float32))
    ref_scaled = spatial_nl_reference(x, wt, wp, wg, wz, use_scale=True)
    np.testing.assert_allclose(np.asarray(out_scaled), np.asarray(ref_scaled),
                               rtol=1e-4, atol=1e-4)

    print("KERNEL_OK")
</pallas_src>

<mosaic_0001>
module attributes {stable_mosaic.version = 11 : i64} {
  func.func @_spatial_nl_kernel(%arg0: i32, %arg1: memref<1x8x128xf32, #tpu.memory_space<vmem>>, %arg2: memref<12x8xbf16, #tpu.memory_space<vmem>>, %arg3: memref<8x4xbf16, #tpu.memory_space<vmem>>, %arg4: memref<1x8x128xf32, #tpu.memory_space<vmem>>, %arg5: memref<1x8x1xf32, #tpu.memory_space<vmem>>, %arg6: memref<1x8x1xf32, #tpu.memory_space<vmem>>, %arg7: memref<4x128xbf16, #tpu.memory_space<vmem>>, %arg8: memref<4x128xbf16, #tpu.memory_space<vmem>>, %arg9: memref<128x4xf32, #tpu.memory_space<vmem>>) attributes {dimension_semantics = [#tpu.dimension_semantics<parallel>], iteration_bounds = array<i64: 2>, scalar_prefetch = 0 : i64, scratch_operands = 3 : i64, tpu.core_type = #tpu.core_type<tc>, window_params = [{transform_indices = @transform_0, window_bounds = array<i64: 1, 8, 128>}, {pipeline_mode = #tpu.pipeline_mode<synchronous>, transform_indices = @transform_1, window_bounds = array<i64: 12, 8>}, {pipeline_mode = #tpu.pipeline_mode<synchronous>, transform_indices = @transform_2, window_bounds = array<i64: 8, 4>}, {transform_indices = @transform_3, window_bounds = array<i64: 1, 8, 128>}, {transform_indices = @transform_4, window_bounds = array<i64: 1, 8, 1>}, {transform_indices = @transform_5, window_bounds = array<i64: 1, 8, 1>}]} {
    %c0 = arith.constant 0 : index
    %c0_0 = arith.constant 0 : index
    %c0_1 = arith.constant 0 : index
    %0 = vector.load %arg1[%c0, %c0_0, %c0_1] : memref<1x8x128xf32, #tpu.memory_space<vmem>>, vector<1x8x128xf32>
    %1 = vector.shape_cast %0 : vector<1x8x128xf32> to vector<8x128xf32>
    %2 = arith.truncf %1 : vector<8x128xf32> to vector<8x128xbf16>
    %c0_2 = arith.constant 0 : index
    %c0_3 = arith.constant 0 : index
    %3 = vector.load %arg2[%c0_2, %c0_3] : memref<12x8xbf16, #tpu.memory_space<vmem>>, vector<12x8xbf16>
    %cst = arith.constant dense<0.000000e+00> : vector<12x128xf32>
    %4 = tpu.matmul %3, %2, %cst {dimension_numbers = #tpu.dot_dimension_numbers<[1], [0], [0], [1], [0, 0, 1, 1], [], []>} : vector<12x8xbf16>, vector<8x128xbf16>, vector<12x128xf32> -> vector<12x128xf32>
    %5 = vector.extract_strided_slice %4 {offsets = [0, 0], sizes = [4, 128], strides = [1, 1]} : vector<12x128xf32> to vector<4x128xf32>
    %6 = arith.truncf %5 : vector<4x128xf32> to vector<4x128xbf16>
    %7 = vector.extract_strided_slice %4 {offsets = [4, 0], sizes = [4, 128], strides = [1, 1]} : vector<12x128xf32> to vector<4x128xf32>
    %8 = arith.truncf %7 : vector<4x128xf32> to vector<4x128xbf16>
    %c0_4 = arith.constant 0 : index
    %c0_5 = arith.constant 0 : index
    %9 = vector.load %arg7[%c0_4, %c0_5] : memref<4x128xbf16, #tpu.memory_space<vmem>>, vector<4x128xbf16>
    tpu.vector_store %arg7[%c0_4, %c0_5], %8 {strides = array<i32>} : memref<4x128xbf16, #tpu.memory_space<vmem>>, vector<4x128xbf16>,
    %10 = vector.extract_strided_slice %4 {offsets = [8, 0], sizes = [4, 128], strides = [1, 1]} : vector<12x128xf32> to vector<4x128xf32>
    %11 = arith.truncf %10 : vector<4x128xf32> to vector<4x128xbf16>
    %c0_6 = arith.constant 0 : index
    %c0_7 = arith.constant 0 : index
    %12 = vector.load %arg8[%c0_6, %c0_7] : memref<4x128xbf16, #tpu.memory_space<vmem>>, vector<4x128xbf16>
    tpu.vector_store %arg8[%c0_6, %c0_7], %11 {strides = array<i32>} : memref<4x128xbf16, #tpu.memory_space<vmem>>, vector<4x128xbf16>,
    %cst_8 = arith.constant 0.000000e+00 : f32
    %13 = vector.broadcast %cst_8 : f32 to vector<128x4xf32>
    %c0_9 = arith.constant 0 : index
    %c0_10 = arith.constant 0 : index
    %14 = vector.load %arg9[%c0_9, %c0_10] : memref<128x4xf32, #tpu.memory_space<vmem>>, vector<128x4xf32>
    tpu.vector_store %arg9[%c0_9, %c0_10], %13 {strides = array<i32>} : memref<128x4xf32, #tpu.memory_space<vmem>>, vector<128x4xf32>,
    %c0_11 = arith.constant 0 : index
    %c0_12 = arith.constant 0 : index
    %15 = vector.load %arg7[%c0_11, %c0_12] : memref<4x128xbf16, #tpu.memory_space<vmem>>, vector<4x128xbf16>
    %c0_13 = arith.constant 0 : index
    %c0_14 = arith.constant 0 : index
    %16 = vector.load %arg8[%c0_13, %c0_14] : memref<4x128xbf16, #tpu.memory_space<vmem>>, vector<4x128xbf16>
    %cst_15 = arith.constant dense<0.000000e+00> : vector<128x128xf32>
    %17 = tpu.matmul %6, %15, %cst_15 {dimension_numbers = #tpu.dot_dimension_numbers<[0], [0], [1], [1], [0, 1, 1, 1], [], []>} : vector<4x128xbf16>, vector<4x128xbf16>, vector<128x128xf32> -> vector<128x128xf32>
    %cst_16 = arith.constant dense<0xFF800000> : vector<128xf32>
    %18 = vector.multi_reduction <maximumf>, %17, %cst_16 [0] : vector<128x128xf32> to vector<128xf32>
    %19 = vector.shape_cast %18 : vector<128xf32> to vector<1x128xf32>
    %20 = vector.broadcast %19 : vector<1x128xf32> to vector<128x128xf32>
    %21 = arith.subf %17, %20 : vector<128x128xf32>
    %22 = math.exp %21 : vector<128x128xf32>
    %cst_17 = arith.constant dense<0.000000e+00> : vector<128xf32>
    %23 = vector.multi_reduction <add>, %22, %cst_17 [0] : vector<128x128xf32> to vector<128xf32>
    %24 = vector.shape_cast %23 : vector<128xf32> to vector<1x128xf32>
    %25 = tpu.reciprocal %24 {approx = true} : vector<1x128xf32> -> vector<1x128xf32>
    %26 = vector.broadcast %25 : vector<1x128xf32> to vector<128x128xf32>
    %27 = arith.mulf %22, %26 : vector<128x128xf32>
    %c0_18 = arith.constant 0 : index
    %c0_19 = arith.constant 0 : index
    %28 = vector.load %arg9[%c0_18, %c0_19] : memref<128x4xf32, #tpu.memory_space<vmem>>, vector<128x4xf32>
    %29 = arith.truncf %27 : vector<128x128xf32> to vector<128x128xbf16>
    %cst_20 = arith.constant dense<0.000000e+00> : vector<128x4xf32>
    %30 = tpu.matmul %29, %16, %cst_20 {dimension_numbers = #tpu.dot_dimension_numbers<[1], [1], [0], [0], [0, 0, 1, 0], [], []>} : vector<128x128xbf16>, vector<4x128xbf16>, vector<128x4xf32> -> vector<128x4xf32>
    %31 = arith.addf %28, %30 : vector<128x4xf32>
    %c0_21 = arith.constant 0 : index
    %c0_22 = arith.constant 0 : index
    %32 = vector.load %arg9[%c0_21, %c0_22] : memref<128x4xf32, #tpu.memory_space<vmem>>, vector<128x4xf32>
    tpu.vector_store %arg9[%c0_21, %c0_22], %31 {strides = array<i32>} : memref<128x4xf32, #tpu.memory_space<vmem>>, vector<128x4xf32>,
    %c0_23 = arith.constant 0 : index
    %c0_24 = arith.constant 0 : index
    %33 = vector.load %arg3[%c0_23, %c0_24] : memref<8x4xbf16, #tpu.memory_space<vmem>>, vector<8x4xbf16>
    %c0_25 = arith.constant 0 : index
    %c0_26 = arith.constant 0 : index
    %34 = vector.load %arg9[%c0_25, %c0_26] : memref<128x4xf32, #tpu.memory_space<vmem>>, vector<128x4xf32>
    %35 = arith.truncf %34 : vector<128x4xf32> to vector<128x4xbf16>
    %cst_27 = arith.constant dense<0.000000e+00> : vector<8x128xf32>
    %36 = tpu.matmul %33, %35, %cst_27 {dimension_numbers = #tpu.dot_dimension_numbers<[1], [1], [0], [0], [0, 0, 1, 0], [], []>} : vector<8x4xbf16>, vector<128x4xbf16>, vector<8x128xf32> -> vector<8x128xf32>
    %c0_28 = arith.constant 0 : index
    %c0_29 = arith.constant 0 : index
    %c0_30 = arith.constant 0 : index
    %37 = vector.load %arg4[%c0_28, %c0_29, %c0_30] : memref<1x8x128xf32, #tpu.memory_space<vmem>>, vector<1x8x128xf32>
    %38 = vector.shape_cast %37 : vector<1x8x128xf32> to vector<8x128xf32>
    %39 = vector.shape_cast %36 : vector<8x128xf32> to vector<1x8x128xf32>
    tpu.vector_store %arg4[%c0_28, %c0_29, %c0_30], %39 {strides = array<i32>} : memref<1x8x128xf32, #tpu.memory_space<vmem>>, vector<1x8x128xf32>,
    %cst_31 = arith.constant dense<0.000000e+00> : vector<8xf32>
    %40 = vector.multi_reduction <add>, %36, %cst_31 [1] : vector<8x128xf32> to vector<8xf32>
    %41 = vector.shape_cast %40 : vector<8xf32> to vector<8x1xf32>
    %c0_32 = arith.constant 0 : index
    %c0_33 = arith.constant 0 : index
    %c0_34 = arith.constant 0 : index
    %42 = vector.load %arg5[%c0_32, %c0_33, %c0_34] : memref<1x8x1xf32, #tpu.memory_space<vmem>>, vector<1x8x1xf32>
    %43 = vector.shape_cast %42 : vector<1x8x1xf32> to vector<8x1xf32>
    %44 = vector.shape_cast %41 : vector<8x1xf32> to vector<1x8x1xf32>
    tpu.vector_store %arg5[%c0_32, %c0_33, %c0_34], %44 {strides = array<i32>} : memref<1x8x1xf32, #tpu.memory_space<vmem>>, vector<1x8x1xf32>,
    %45 = arith.mulf %36, %36 : vector<8x128xf32>
    %cst_35 = arith.constant dense<0.000000e+00> : vector<8xf32>
    %46 = vector.multi_reduction <add>, %45, %cst_35 [1] : vector<8x128xf32> to vector<8xf32>
    %47 = vector.shape_cast %46 : vector<8xf32> to vector<8x1xf32>
    %c0_36 = arith.constant 0 : index
    %c0_37 = arith.constant 0 : index
    %c0_38 = arith.constant 0 : index
    %48 = vector.load %arg6[%c0_36, %c0_37, %c0_38] : memref<1x8x1xf32, #tpu.memory_space<vmem>>, vector<1x8x1xf32>
    %49 = vector.shape_cast %48 : vector<1x8x1xf32> to vector<8x1xf32>
    %50 = vector.shape_cast %47 : vector<8x1xf32> to vector<1x8x1xf32>
    tpu.vector_store %arg6[%c0_36, %c0_37, %c0_38], %50 {strides = array<i32>} : memref<1x8x1xf32, #tpu.memory_space<vmem>>, vector<1x8x1xf32>,
    return
  }
  func.func @transform_0(%arg0: i32) -> (i32, i32, i32) {
    %c0_i32 = arith.constant 0 : i32
    %c0_i32_0 = arith.constant 0 : i32
    %c0_i32_1 = arith.constant 0 : i32
    return %arg0, %c0_i32, %c0_i32_0 : i32, i32, i32
  }
  func.func @transform_1(%arg0: i32) -> (i32, i32) {
    %c0_i32 = arith.constant 0 : i32
    %c0_i32_0 = arith.constant 0 : i32
    %c0_i32_1 = arith.constant 0 : i32
    return %c0_i32, %c0_i32_0 : i32, i32
  }
  func.func @transform_2(%arg0: i32) -> (i32, i32) {
    %c0_i32 = arith.constant 0 : i32
    %c0_i32_0 = arith.constant 0 : i32
    %c0_i32_1 = arith.constant 0 : i32
    return %c0_i32, %c0_i32_0 : i32, i32
  }
  func.func @transform_3(%arg0: i32) -> (i32, i32, i32) {
    %c0_i32 = arith.constant 0 : i32
    %c0_i32_0 = arith.constant 0 : i32
    %c0_i32_1 = arith.constant 0 : i32
    return %arg0, %c0_i32, %c0_i32_0 : i32, i32, i32
  }
  func.func @transform_4(%arg0: i32) -> (i32, i32, i32) {
    %c0_i32 = arith.constant 0 : i32
    %c0_i32_0 = arith.constant 0 : i32
    %c0_i32_1 = arith.constant 0 : i32
    return %arg0, %c0_i32, %c0_i32_0 : i32, i32, i32
  }
  func.func @transform_5(%arg0: i32) -> (i32, i32, i32) {
    %c0_i32 = arith.constant 0 : i32
    %c0_i32_0 = arith.constant 0 : i32
    %c0_i32_1 = arith.constant 0 : i32
    return %arg0, %c0_i32, %c0_i32_0 : i32, i32, i32
  }
}

</mosaic_0001>

<bundles_post_ra>
// kernel: tpu_custom_call.1
= control target key start
LH: loop header
LB: loop body
LE: loop exit
PB: predicated region body
PF: predicated region fallthrough
CT: control target
= control target key end

     0   :  { %11 = vsyncpa [#allocation6], 0  ;;  %s1474_s0 = inlined_call_operand.vmem [shape: f32[2,8,128], index: 0, kind: input, shape index: {}]   ;;  %s1475_s1 = inlined_call_operand.vmem [shape: bf16[12,8], index: 1, kind: input, shape index: {}]   ;;  %s1476_s2 = inlined_call_operand.vmem [shape: bf16[8,4], index: 2, kind: input, shape index: {}]   ;;  %s1477_s3 = inlined_call_operand.hbm [shape: f32[2,8,128], index: 3, kind: output, shape index: {0}]   ;;  %s1478_s4 = inlined_call_operand.vmem [shape: f32[2,8,1], index: 4, kind: output, shape index: {1}]   ;;  %s1479_s5 = inlined_call_operand.vmem [shape: f32[2,8,1], index: 5, kind: output, shape index: {2}]  }
   0x1   :  { %13 = vsyncpa [#allocation6 + $0x1], 0  ;;  %s1261_s18 = smov 0   ;;  %s1263_s19 = smov 0  }
   0x2   :  { %s1265_s20 = smov 0   ;;  %s1267_s21 = smov 0  }
   0x3 LB: > { %s1282_s22 = sadd.s32 4294967295, %s1225_s21   ;;  %s970_s23 = sadd.s32 4294967294, %s1225_s21   ;;  %s1225_s21 = sphi %s1267_s21, %s1485_s21   ;;  %s1221_s20 = sphi %s1265_s20, %s1484_s20   ;;  %s1217_s19 = sphi %s1263_s19, %s1483_s19   ;;  %s1213_s18 = sphi %s1261_s18, %s1482_s18  }
   0x4   : > { %s1286_s24 = sadd.s32 1, %s1225_s21   ;;  %s94_s25 = sadd.s32 1, %s1221_s20 }
   0x5   : > { %s91_s26 = ssub.s32 %s1225_s21, %s1286_s24  ;;  %p104_p0 = scmp.ne.s32.totalorder %s1221_s20, %s1217_s19 }
   0x6   : > { %p92_p1 = scmp.eq.s32.totalorder %s91_s26, 0  ;;  %p105_p2 = scmp.eq.s32.totalorder %s1282_s22, 1 }
   0x7   : > { %p110_p3 = scmp.ne.s32.totalorder %s1217_s19, %s1213_s18  ;;  %p111_p4 = scmp.eq.s32.totalorder %s970_s23, 1 }
   0x8   : > { %s1297_s27 = scalar_select %p92_p1, %s1221_s20, %s94_s25  }
   0x9   : > { %p1299_p5 = por %p105_p2, %p104_p0  ;;  %p1303_p6 = por %p111_p4, %p110_p3 }
   0xa   : > { %p973_p7 = scmp.ge.s32.totalorder %s1225_s21, 1  ;;  %p194_p8 = scmp.lt.s32.totalorder %s1225_s21, 3 }
   0xc   : > { %p195_p9 = pnand %p973_p7, %p194_p8 }
   0xd   : > { %p229_p10 = scmp.lt.s32.totalorder (!%p195_p9), %s1282_s22, 1  ;;  %v1227_v0 = vmov (!%p195_p9), 0.0   ;;  %vm1228_vm0 = vmmov (!%p195_p9), 0   ;;  %vm255_vm1 = vcmask (!%p195_p9), 1043456   ;;  %v1128_v4 = vld [vmem:[%s1475_s1] sm:$0x3f] (!%p195_p9)   ;;  %v305_v7 = vlaneseq (!%p195_p9) }
   0xe   : > { %198 = sbr.rel (%p195_p9) target bundleno = 1334 (0x536), region = 32  ;;  %1022 = vmatprep.subr.bf16.mxu0 (!%p195_p9), %v1227_v0  ;;  %1024 = vmatprep.mubr.msk.bf16.mxu0 (!%p195_p9), %vm1228_vm0, %v1227_v0  ;;  %vm251_vm2 = vcmask (!%p195_p9), 64512   ;;  %vm314_vm3 = vcmask (!%p195_p9), 31744   ;;  %v1229_v5 = vmov (!%p195_p9), 1983009808   ;;  %vm373_vm4 = vcmask (!%p195_p9), 1041408  }
   0xf   : > { %315 = vst.msk [vmem:[#allocation4] sm:$0xff] (!%p195_p9), %vm314_vm3, %v1227_v0  ;;  %316 = vst.msk [vmem:[#allocation4 + $0x8] sm:$0xff] (!%p195_p9), %vm314_vm3, %v1227_v0  ;;  %v303_v6 = vunpack.c.l.s4 (!%p195_p9), %v1229_v5  ;;  %v306_v9 = vshrl.u32 (!%p195_p9), %v305_v7, 7  ;;  %s214_s14 = sand.u32 (!%p195_p9), 1, %s1217_s19   ;;  %s990_s17 = sshll.u32 (!%p195_p9), %s1282_s22, 7 }
  0x10   : > { %317 = vst.msk [vmem:[#allocation4 + $0x10] sm:$0xff] (!%p195_p9), %vm314_vm3, %v1227_v0  ;;  %318 = vst.msk [vmem:[#allocation4 + $0x18] sm:$0xff] (!%p195_p9), %vm314_vm3, %v1227_v0  ;;  %s974_s15 = sshll.u32 (!%p195_p9), %s214_s14, 3  ;;  %s1430_s26 = scalar_lea.hbm (!%p195_p9), %s1477_s3, %s990_s17 }
  0x11   : > { %319 = vst.msk [vmem:[#allocation4 + $0x20] sm:$0xff] (!%p195_p9), %vm314_vm3, %v1227_v0  ;;  %320 = vst.msk [vmem:[#allocation4 + $0x28] sm:$0xff] (!%p195_p9), %vm314_vm3, %v1227_v0  ;;  %v304_v8 = vunpack.c.0.s8 (!%p195_p9), %v303_v6  ;;  %s216_s16 = scalar_lea.vmem (!%p195_p9), [#allocation5], %s974_s15  ;;  %s836_s7 = scalar_lea.sflag (!%p195_p9), [#allocation6], %s214_s14 }
  0x12   : > { %321 = vst.msk [vmem:[#allocation4 + $0x30] sm:$0xff] (!%p195_p9), %vm314_vm3, %v1227_v0  ;;  %322 = vst.msk [vmem:[#allocation4 + $0x38] sm:$0xff] (!%p195_p9), %vm314_vm3, %v1227_v0 }
  0x13   : > { %323 = vst.msk [vmem:[#allocation4 + $0x40] sm:$0xff] (!%p195_p9), %vm314_vm3, %v1227_v0  ;;  %324 = vst.msk [vmem:[#allocation4 + $0x48] sm:$0xff] (!%p195_p9), %vm314_vm3, %v1227_v0  ;;  %v307_v10 = vsub.s32 (!%p195_p9), %v304_v8, %v306_v9 }
  0x14   : > { %325 = vst.msk [vmem:[#allocation4 + $0x50] sm:$0xff] (!%p195_p9), %vm314_vm3, %v1227_v0  ;;  %326 = vst.msk [vmem:[#allocation4 + $0x58] sm:$0xff] (!%p195_p9), %vm314_vm3, %v1227_v0 }
  0x15   : > { %s230_s30 = scalar_select %p229_p10, %s1282_s22, 1  ;;  %327 = vst.msk [vmem:[#allocation4 + $0x60] sm:$0xff] %vm314_vm3, %v1227_v0  ;;  %328 = vst.msk [vmem:[#allocation4 + $0x68] sm:$0xff] %vm314_vm3, %v1227_v0 }
  0x16   : > { %329 = vst.msk [vmem:[#allocation4 + $0x70] sm:$0xff] %vm314_vm3, %v1227_v0  ;;  %330 = vst.msk [vmem:[#allocation4 + $0x78] sm:$0xff] %vm314_vm3, %v1227_v0 }
  0x17   : > { %s1314_s6 = sshll.u32 %s230_s30, 3  ;;  %s857_s30 = sshll.u32 %s216_s16, 4  ;;  %s858_s30 = int_to_ptr.vmem [resolvable:$true] %s857_s30 }
  0x18   : > { %s232_s9 = scalar_lea.vmem %s1474_s0, %s1314_s6  ;;  %s1163_s8 = scalar_lea.vmem %s858_s30, 128 }
  0x19   : > { %v242_v1 = vld [vmem:[%s232_s9] sm:$0xff]  ;;  %p1164_p11 = scmp.ne.s32.totalorder %s858_s30, %s1163_s8  ;;  %s1230_s9 = smov [#allocation5]  }
  0x1a   : > { %v243_v2 = vpack.c.bf16 %v242_v1, %v242_v1  ;;  %s1167_s10 = sshll.u32 %s1230_s9, 4  ;;  %s1168_s10 = int_to_ptr.vmem [resolvable:$false] %s1167_s10 }
  0x1b   : > { %p1165_p12 = pnand %p1164_p11, %p1299_p5  ;;  %s1169_s11 = scalar_lea.vmem %s1168_s10, 256 }
  0x1c   : > { %v257_v3 = vsel %vm255_vm1, %v243_v2, 0  ;;  %p1170_p0 = scmp.lt.s32.totalorder %s858_s30, %s1168_s10  ;;  %p1171_p1 = scmp.lt.s32.totalorder %s1169_s11, %s1163_s8 }
  0x1d   : > { %1023 = vmatpush3.bf16.msra.mxu0 %v257_v3  ;;  %p1166_p13 = pneg %p1165_p12 }
  0x1e   : > { %p1172_p2 = por %p1171_p1, %p1170_p0 }
  0x20   : > { %1025 = vmatmul.mubr.msk.bf16.vlgmr.msra.gmra.mrb[0].mxu0 %vm251_vm2, %v1128_v4  ;;  %p1173_p3 = pnand %p1172_p2, %p1166_p13 }
  0xf3   : > { %v293_v11 = vpop.f32.mrb[0].mxu0 }
  0xf4   : > { %v300_v12 = vpack.c.bf16 %v293_v11, %v293_v11  ;;  %v1026_v13 = vpop.f32.mrb[1].mxu0 }
  0xf5   : > { %v296_v14 = vpop.f32.mrb[2].mxu0 }
  0xf6   : > { %v308_v15 = vrot.slane %v300_v12, %v307_v10  ;;  %v312_v16 = vpack.c.bf16 %v296_v14, %v296_v14  ;;  %333 = vxpose.xlu0.c.b16.start.end [1/1] (short) %v300_v12, 128  ;;  %v1027_v17 = vpop.f32.mrb[3].mxu0 }
  0xf8   : > { %v309_v18 = vcombine.high %v308_v15, %v308_v15  ;;  %313 = vst [vmem:[#allocation3] sm:$0x3] %v312_v16 }
  0xfa   : > { %311 = vst [vmem:[#allocation2] sm:$0x3] %v309_v18 }
  0xff   : > { %v332_v19 = vld [vmem:[#allocation3] sm:$0x3] }
 0x100   : > { %1046 = vmatprep.subr.bf16.mxu0 %v332_v19 }
 0x101   : > { %1047 = vmatpush3.bf16.xpose.msra.mxu0 %v332_v19  ;;  %v331_v20 = vld [vmem:[#allocation2] sm:$0x3] }
 0x102   : > { %1084 = vmatprep.subr.msk.bf16.mxu1 %vm373_vm4, %v331_v20  ;;  %v375_v21 = vsel %vm373_vm4, %v331_v20, 0 }
 0x103   : > { %1029 = vmatpush3.bf16.msra.mxu1 %v375_v21 }
 0x104   : > { %1064 = vmatprep.subr.bf16.mxu1 %v1227_v0 }
 0x15c   : > { %v341_v22 = vpop.trf.xlu0 }
 0x15d   : > { %1030 = vmatprep.mubr.msk.bf16.mxu1 %vm314_vm3, %v341_v22 }
 0x160   : > { %v342_v23 = vpop.trf.xlu0 }
 0x161   : > { %1031 = vmatmul.mubr.msk.bf16.vlgmr.msra.gmra.mrb[0].mxu1 %vm314_vm3, %v342_v23 }
 0x164   : > { %v343_v24 = vpop.trf.xlu0 }
 0x165   : > { %1034 = vmatprep.mubr.msk.bf16.mxu1 %vm314_vm3, %v343_v24 }
 0x168   : > { %v344_v25 = vpop.trf.xlu0 }
 0x169   : > { %1035 = vmatmul.mubr.msk.bf16.gmra.mrb[4].mxu1 %vm314_vm3, %v344_v25 }
 0x16c   : > { %v345_v26 = vpop.trf.xlu0 }
 0x16d   : > { %1038 = vmatprep.mubr.msk.bf16.mxu1 %vm314_vm3, %v345_v26 }
 0x170   : > { %v346_v27 = vpop.trf.xlu0 }
 0x171   : > { %1039 = vmatmul.mubr.msk.bf16.gmra.mrb[8].mxu1 %vm314_vm3, %v346_v27 }
 0x174   : > { %v347_v28 = vpop.trf.xlu0 }
 0x175   : > { %1042 = vmatprep.mubr.msk.bf16.mxu1 %vm314_vm3, %v347_v28 }
 0x178   : > { %v348_v29 = vpop.trf.xlu0 }
 0x179   : > { %1043 = vmatmul.mubr.msk.bf16.gmra.mrb[12].mxu1 %vm314_vm3, %v348_v29 }
 0x17a   : > { %1080 = vmatprep.mubr.msk.bf16.mxu1 %vm1228_vm0, %v1227_v0 }
 0x234   : > { %v1032_v30 = vpop.f32.mrb[0].mxu1 }
 0x235   : > { %v411_v31 = vpop.f32.mrb[1].mxu1 }
 0x236   : > { %v1033_v32 = vpop.f32.mrb[2].mxu1 }
 0x237   : > { %v414_v33 = vpop.f32.mrb[3].mxu1 }
 0x23c   : > { %v1036_v34 = vpop.f32.mrb[4].mxu1 }
 0x23d   : > { %v476_v35 = vmax.f32 %v1032_v30, %v1036_v34  ;;  %v427_v36 = vpop.f32.mrb[5].mxu1 }
 0x23e   : > { %v474_v37 = vmax.f32 %v411_v31, %v427_v36  ;;  %v1037_v38 = vpop.f32.mrb[6].mxu1 }
 0x23f   : > { %v477_v39 = vmax.f32 %v1033_v32, %v1037_v38  ;;  %v430_v40 = vpop.f32.mrb[7].mxu1 }
 0x240   : > { %v475_v41 = vmax.f32 %v414_v33, %v430_v40 }
 0x244   : > { %v1366_v42 = vpop.f32.mrb[8].mxu1 }
 0x245   : > { %v480_v43 = vmax.f32 %v476_v35, %v1366_v42  ;;  %v443_v44 = vpop.f32.mrb[9].mxu1 }
 0x246   : > { %v478_v45 = vmax.f32 %v474_v37, %v443_v44  ;;  %v1369_v46 = vpop.f32.mrb[10].mxu1 }
 0x247   : > { %v481_v47 = vmax.f32 %v477_v39, %v1369_v46  ;;  %v446_v48 = vpop.f32.mrb[11].mxu1 }
 0x248   : > { %v479_v49 = vmax.f32 %v475_v41, %v446_v48 }
 0x24c   : > { %v1372_v50 = vpop.f32.mrb[12].mxu1 }
 0x24d   : > { %v484_v51 = vmax.f32 %v480_v43, %v1372_v50  ;;  %v1375_v52 = vpop.f32.mrb[13].mxu1 }
 0x24e   : > { %v482_v53 = vmax.f32 %v478_v45, %v1375_v52  ;;  %v1378_v54 = vpop.f32.mrb[14].mxu1 }
 0x24f   : > { %v485_v55 = vmax.f32 %v481_v47, %v1378_v54  ;;  %v1381_v56 = vpop.f32.mrb[15].mxu1 }
 0x250   : > { %v483_v57 = vmax.f32 %v479_v49, %v1381_v56 }
 0x251   : > { %v487_v58 = vmax.f32 %v484_v51, %v485_v55 }
 0x252   : > { %v486_v59 = vmax.f32 %v482_v53, %v483_v57 }
 0x254   : > { %v488_v60 = vmax.f32 %v486_v59, %v487_v58 }
 0x256   : > { %v489_v61 = vrot.slane %v488_v60, 4 }
 0x258   : > { %v490_v62 = vmax.f32 %v488_v60, %v489_v61 }
 0x25a   : > { %v491_v63 = vrot.slane %v490_v62, 2 }
 0x25c   : > { %v492_v1 = vmax.f32 %v490_v62, %v491_v63 }
 0x25e   : > { %v493_v2 = vrot.slane %v492_v1, 1 }
 0x260   : > { %v494_v3 = vmax.f32 %v492_v1, %v493_v2 }
 0x262   : > { %v495_v4 = vsub.f32 %v411_v31, %v494_v3  ;;  %v496_v5 = vsub.f32 %v414_v33, %v494_v3  ;;  %v497_v6 = vsub.f32 %v1032_v30, %v494_v3  ;;  %v498_v7 = vsub.f32 %v1033_v32, %v494_v3 }
 0x263   : > { %v499_v8 = vsub.f32 %v427_v36, %v494_v3  ;;  %v500_v9 = vsub.f32 %v430_v40, %v494_v3  ;;  %v501_v10 = vsub.f32 %v1036_v34, %v494_v3  ;;  %v502_v11 = vsub.f32 %v1037_v38, %v494_v3 }
 0x264   : > { %v503_v12 = vsub.f32 %v443_v44, %v494_v3  ;;  %v504_v13 = vsub.f32 %v446_v48, %v494_v3  ;;  %v505_v14 = vsub.f32 %v1366_v42, %v494_v3  ;;  %v506_v15 = vsub.f32 %v1369_v46, %v494_v3 }
 0x265   : > { %v507_v16 = vsub.f32 %v1375_v52, %v494_v3  ;;  %v508_v17 = vsub.f32 %v1381_v56, %v494_v3  ;;  %v509_v18 = vsub.f32 %v1372_v50, %v494_v3  ;;  %v510_v19 = vsub.f32 %v1378_v54, %v494_v3 }
 0x266   : > { %v511_v20 = vmul.f32 1.442695, %v495_v4  ;;  %v513_v21 = vmul.f32 1.442695, %v496_v5  ;;  %v515_v22 = vmul.f32 1.442695, %v497_v6 }
 0x267   : > { %v517_v23 = vmul.f32 1.442695, %v498_v7  ;;  %v519_v24 = vmul.f32 1.442695, %v499_v8  ;;  %v521_v25 = vmul.f32 1.442695, %v500_v9 }
 0x268   : > { %1129 = vpow2.f32 %v511_v20  ;;  %v523_v26 = vmul.f32 1.442695, %v501_v10  ;;  %v525_v27 = vmul.f32 1.442695, %v502_v11  ;;  %v527_v30 = vmul.f32 1.442695, %v503_v12 }
 0x269   : > { %1131 = vpow2.f32 %v513_v21  ;;  %v529_v33 = vmul.f32 1.442695, %v504_v13  ;;  %v531_v36 = vmul.f32 1.442695, %v505_v14  ;;  %v533_v39 = vmul.f32 1.442695, %v506_v15 }
 0x26a   : > { %1133 = vpow2.f32 %v515_v22  ;;  %v535_v42 = vmul.f32 1.442695, %v507_v16  ;;  %v537_v45 = vmul.f32 1.442695, %v508_v17  ;;  %v539_v48 = vmul.f32 1.442695, %v509_v18 }
 0x26b   : > { %1135 = vpow2.f32 %v517_v23  ;;  %v541_v51 = vmul.f32 1.442695, %v510_v19 }
 0x26c   : > { %1137 = vpow2.f32 %v519_v24 }
 0x26d   : > { %1139 = vpow2.f32 %v521_v25 }
 0x26e   : > { %1141 = vpow2.f32 %v523_v26 }
 0x26f   : > { %1143 = vpow2.f32 %v525_v27 }
 0x270   : > { %1145 = vpow2.f32 %v527_v30 }
 0x271   : > { %1147 = vpow2.f32 %v529_v33 }
 0x272   : > { %v1130_v28 = vpop.eup %1129  ;;  %1149 = vpow2.f32 %v531_v36  ;;  %v581_v36 = vld [vmem:[#allocation4] sm:$0xff] }
 0x273   : > { %v1132_v29 = vpop.eup %1131  ;;  %1151 = vpow2.f32 %v533_v39 }
 0x274   : > { %v543_v31 = vadd.f32 %v1132_v29, %v1130_v28  ;;  %v1134_v32 = vpop.eup %1133  ;;  %1153 = vpow2.f32 %v535_v42 }
 0x275   : > { %v1136_v35 = vpop.eup %1135  ;;  %1155 = vpow2.f32 %v537_v45 }
 0x276   : > { %v544_v34 = vadd.f32 %v1134_v32, %v543_v31  ;;  %v1138_v38 = vpop.eup %1137  ;;  %1157 = vpow2.f32 %v539_v48  ;;  %v585_v48 = vld [vmem:[#allocation4 + $0x20] sm:$0xff] }
 0x277   : > { %v1140_v41 = vpop.eup %1139  ;;  %1159 = vpow2.f32 %v541_v51 }
 0x278   : > { %v545_v37 = vadd.f32 %v1136_v35, %v544_v34  ;;  %v1142_v44 = vpop.eup %1141 }
 0x279   : > { %v1144_v47 = vpop.eup %1143 }
 0x27a   : > { %v546_v40 = vadd.f32 %v1138_v38, %v545_v37  ;;  %v1146_v50 = vpop.eup %1145 }
 0x27b   : > { %v1148_v53 = vpop.eup %1147 }
 0x27c   : > { %v547_v43 = vadd.f32 %v1140_v41, %v546_v40  ;;  %v1150_v55 = vpop.eup %1149 }
 0x27d   : > { %v1152_v57 = vpop.eup %1151 }
 0x27e   : > { %v548_v46 = vadd.f32 %v1142_v44, %v547_v43  ;;  %v1154_v59 = vpop.eup %1153 }
 0x27f   : > { %v1156_v61 = vpop.eup %1155 }
 0x280   : > { %v549_v49 = vadd.f32 %v1144_v47, %v548_v46  ;;  %v1158_v63 = vpop.eup %1157 }
 0x281   : > { %v1160_v2 = vpop.eup %1159 }
 0x282   : > { %v550_v52 = vadd.f32 %v1146_v50, %v549_v49 }
 0x284   : > { %v551_v54 = vadd.f32 %v1148_v53, %v550_v52 }
 0x286   : > { %v552_v56 = vadd.f32 %v1150_v55, %v551_v54 }
 0x288   : > { %v553_v58 = vadd.f32 %v1152_v57, %v552_v56 }
 0x28a   : > { %v554_v60 = vadd.f32 %v1154_v59, %v553_v58 }
 0x28c   : > { %v555_v62 = vadd.f32 %v1156_v61, %v554_v60 }
 0x28e   : > { %v556_v1 = vadd.f32 %v1158_v63, %v555_v62 }
 0x290   : > { %v557_v3 = vadd.f32 %v1160_v2, %v556_v1 }
 0x292   : > { %v558_v4 = vrot.slane %v557_v3, 4 }
 0x294   : > { %v559_v5 = vadd.f32 %v558_v4, %v557_v3  ;;  %v592_v3 = vld [vmem:[#allocation4 + $0x58] sm:$0xff] }
 0x296   : > { %v560_v6 = vrot.slane %v559_v5, 2 }
 0x298   : > { %v561_v7 = vadd.f32 %v560_v6, %v559_v5  ;;  %v590_v6 = vld [vmem:[#allocation4 + $0x48] sm:$0xff] }
 0x29a   : > { %v562_v8 = vrot.slane %v561_v7, 1 }
 0x29c   : > { %v563_v9 = vadd.f32 %v562_v8, %v561_v7 }
 0x29e   : > { %1161 = vrcp.f32 %v563_v9 }
 0x2a8   : > { %v1162_v10 = vpop.eup %1161 }
 0x2a9   : > { %v565_v11 = vmul.f32 %v1162_v10, %v1130_v28  ;;  %v566_v12 = vmul.f32 %v1162_v10, %v1132_v29  ;;  %v567_v13 = vmul.f32 %v1162_v10, %v1134_v32  ;;  %v568_v14 = vmul.f32 %v1162_v10, %v1136_v35  ;;  %v583_v35 = vld [vmem:[#allocation4 + $0x10] sm:$0xff] }
 0x2aa   : > { %v569_v15 = vmul.f32 %v1162_v10, %v1138_v38  ;;  %v570_v16 = vmul.f32 %v1162_v10, %v1140_v41  ;;  %v571_v17 = vmul.f32 %v1162_v10, %v1142_v44  ;;  %v572_v18 = vmul.f32 %v1162_v10, %v1144_v47  ;;  %v584_v38 = vld [vmem:[#allocation4 + $0x18] sm:$0xff]  ;;  %v582_v41 = vld [vmem:[#allocation4 + $0x8] sm:$0xff]  ;;  %v587_v47 = vld [vmem:[#allocation4 + $0x30] sm:$0xff] }
 0x2ab   : > { %v597_v19 = vpack.c.bf16 %v566_v12, %v565_v11  ;;  %v598_v20 = vpack.c.bf16 %v568_v14, %v567_v13  ;;  %v573_v21 = vmul.f32 %v1162_v10, %v1146_v50  ;;  %v574_v22 = vmul.f32 %v1162_v10, %v1148_v53  ;;  %v588_v50 = vld [vmem:[#allocation4 + $0x38] sm:$0xff]  ;;  %v586_v53 = vld [vmem:[#allocation4 + $0x28] sm:$0xff] }
 0x2ac   : > { %v599_v23 = vpack.c.bf16 %v570_v16, %v569_v15  ;;  %v600_v24 = vpack.c.bf16 %v572_v18, %v571_v17  ;;  %v575_v25 = vmul.f32 %v1162_v10, %v1150_v55  ;;  %v576_v26 = vmul.f32 %v1162_v10, %v1152_v57  ;;  %v595_v15 = vld [vmem:[#allocation4 + $0x70] sm:$0xff]  ;;  %v593_v16 = vld [vmem:[#allocation4 + $0x60] sm:$0xff] }
 0x2ad   : > { %1048 = vmatprep.mubr.bf16.mxu0 %v597_v19  ;;  %v601_v27 = vpack.c.bf16 %v574_v22, %v573_v21  ;;  %v577_v30 = vmul.f32 %v1162_v10, %v1154_v59  ;;  %v578_v31 = vmul.f32 %v1162_v10, %v1156_v61  ;;  %v579_v28 = vmul.f32 %v1162_v10, %v1158_v63  ;;  %v591_v61 = vld [vmem:[#allocation4 + $0x50] sm:$0xff]  ;;  %v589_v63 = vld [vmem:[#allocation4 + $0x40] sm:$0xff]  ;;  %v596_v19 = vld [vmem:[#allocation4 + $0x78] sm:$0xff] }
 0x2ae   : > { %1049 = vmatmul.mubr.bf16.vlgmr.msra.gmra.mrb[4].mxu0 %v598_v20  ;;  %v602_v29 = vpack.c.bf16 %v576_v26, %v575_v25  ;;  %v580_v32 = vmul.f32 %v1162_v10, %v1160_v2  ;;  %v594_v22 = vld [vmem:[#allocation4 + $0x68] sm:$0xff] }
 0x2af   : > { %1052 = vmatprep.mubr.bf16.mxu0 %v599_v23  ;;  %v603_v33 = vpack.c.bf16 %v578_v31, %v577_v30 }
 0x2b0   : > { %v604_v34 = vpack.c.bf16 %v580_v32, %v579_v28 }
 0x2b6   : > { %1053 = vmatmul.mubr.bf16.gmra.mrb[8].mxu0 %v600_v24 }
 0x2b7   : > { %1056 = vmatprep.mubr.bf16.mxu0 %v601_v27 }
 0x2be   : > { %1057 = vmatmul.mubr.bf16.gmra.mrb[12].mxu0 %v602_v29 }
 0x2bf   : > { %1060 = vmatprep.mubr.bf16.mxu0 %v603_v33 }
 0x2c6   : > { %1061 = vmatmul.mubr.bf16.gmra.mrb[16].mxu0 %v604_v34 }
 0x381   : > { %v1050_v37 = vpop.f32.mrb[4].mxu0 }
 0x382   : > { %v704_v39 = vadd.f32 %v1050_v37, %v583_v35  ;;  %v639_v40 = vpop.f32.mrb[5].mxu0 }
 0x383   : > { %v702_v42 = vadd.f32 %v639_v40, %v581_v36  ;;  %v1051_v43 = vpop.f32.mrb[6].mxu0 }
 0x384   : > { %720 = vst.msk [vmem:[#allocation4 + $0x10] sm:$0xff] %vm314_vm3, %v704_v39  ;;  %v705_v44 = vadd.f32 %v1051_v43, %v584_v38  ;;  %v642_v45 = vpop.f32.mrb[7].mxu0 }
 0x385   : > { %718 = vst.msk [vmem:[#allocation4] sm:$0xff] %vm314_vm3, %v702_v42  ;;  %v703_v46 = vadd.f32 %v642_v45, %v582_v41 }
 0x386   : > { %721 = vst.msk [vmem:[#allocation4 + $0x18] sm:$0xff] %vm314_vm3, %v705_v44 }
 0x387   : > { %719 = vst.msk [vmem:[#allocation4 + $0x8] sm:$0xff] %vm314_vm3, %v703_v46 }
 0x389   : > { %v1054_v49 = vpop.f32.mrb[8].mxu0 }
 0x38a   : > { %v708_v51 = vadd.f32 %v1054_v49, %v587_v47  ;;  %v655_v52 = vpop.f32.mrb[9].mxu0 }
 0x38b   : > { %v706_v54 = vadd.f32 %v655_v52, %v585_v48  ;;  %v1055_v55 = vpop.f32.mrb[10].mxu0  ;;  %v737_v12 = vld [vmem:[#allocation4 + $0x10] sm:$0xff]  ;;  %v734_v52 = vld [vmem:[%s1476_s2] sm:$0xf] }
 0x38c   : > { %724 = vst.msk [vmem:[#allocation4 + $0x30] sm:$0xff] %vm314_vm3, %v708_v51  ;;  %v709_v56 = vadd.f32 %v1055_v55, %v588_v50  ;;  %v658_v57 = vpop.f32.mrb[11].mxu0  ;;  %v735_v59 = vld [vmem:[#allocation4] sm:$0xff] }
 0x38d   : > { %722 = vst.msk [vmem:[#allocation4 + $0x20] sm:$0xff] %vm314_vm3, %v706_v54  ;;  %v707_v58 = vadd.f32 %v658_v57, %v586_v53  ;;  %v738_v7 = vld [vmem:[#allocation4 + $0x18] sm:$0xff] }
 0x38e   : > { %725 = vst.msk [vmem:[#allocation4 + $0x38] sm:$0xff] %vm314_vm3, %v709_v56  ;;  %v736_v60 = vld [vmem:[#allocation4 + $0x8] sm:$0xff]  ;;  %v752_v14 = vpack.c.bf16 %v738_v7, %v737_v12 }
 0x38f   : > { %723 = vst.msk [vmem:[#allocation4 + $0x28] sm:$0xff] %vm314_vm3, %v707_v58  ;;  %v751_v62 = vpack.c.bf16 %v736_v60, %v735_v59 }
 0x390   : > { %v766_v18 = vsel %vm314_vm3, %v752_v14, 0 }
 0x391   : > { %v1058_v1 = vpop.f32.mrb[12].mxu0  ;;  %v763_v2 = vsel %vm314_vm3, %v751_v62, 0 }
 0x392   : > { %v712_v4 = vadd.f32 %v1058_v1, %v591_v61  ;;  %v671_v5 = vpop.f32.mrb[13].mxu0  ;;  %1065 = vmatpush3.bf16.xpose.msra.mxu1 %v763_v2 }
 0x393   : > { %v710_v8 = vadd.f32 %v671_v5, %v589_v63  ;;  %v1059_v9 = vpop.f32.mrb[14].mxu0  ;;  %1066 = vmatprep.subr.bf16.mxu1 %v1227_v0  ;;  %v741_v33 = vld [vmem:[#allocation4 + $0x30] sm:$0xff] }
 0x394   : > { %728 = vst.msk [vmem:[#allocation4 + $0x50] sm:$0xff] %vm314_vm3, %v712_v4  ;;  %v713_v10 = vadd.f32 %v1059_v9, %v592_v3  ;;  %v674_v11 = vpop.f32.mrb[15].mxu0  ;;  %v739_v30 = vld [vmem:[#allocation4 + $0x20] sm:$0xff] }
 0x395   : > { %726 = vst.msk [vmem:[#allocation4 + $0x40] sm:$0xff] %vm314_vm3, %v710_v8  ;;  %v711_v13 = vadd.f32 %v674_v11, %v590_v6  ;;  %v742_v32 = vld [vmem:[#allocation4 + $0x38] sm:$0xff] }
 0x396   : > { %729 = vst.msk [vmem:[#allocation4 + $0x58] sm:$0xff] %vm314_vm3, %v713_v10  ;;  %v740_v23 = vld [vmem:[#allocation4 + $0x28] sm:$0xff]  ;;  %v754_v34 = vpack.c.bf16 %v742_v32, %v741_v33 }
 0x397   : > { %727 = vst.msk [vmem:[#allocation4 + $0x48] sm:$0xff] %vm314_vm3, %v711_v13  ;;  %v753_v28 = vpack.c.bf16 %v740_v23, %v739_v30 }
 0x398   : > { %v772_v35 = vsel %vm314_vm3, %v754_v34, 0 }
 0x399   : > { %v1062_v17 = vpop.f32.mrb[16].mxu0  ;;  %v769_v29 = vsel %vm314_vm3, %v753_v28, 0 }
 0x39a   : > { %v716_v20 = vadd.f32 %v1062_v17, %v595_v15  ;;  %v687_v21 = vpop.f32.mrb[17].mxu0  ;;  %1067 = vmatpush3.bf16.xpose.msra.mxu1 %v766_v18 }
 0x39b   : > { %v714_v24 = vadd.f32 %v687_v21, %v593_v16  ;;  %v1063_v25 = vpop.f32.mrb[18].mxu0  ;;  %1068 = vmatprep.subr.bf16.mxu1 %v1227_v0  ;;  %v745_v41 = vld [vmem:[#allocation4 + $0x50] sm:$0xff] }
 0x39c   : > { %732 = vst.msk [vmem:[#allocation4 + $0x70] sm:$0xff] %vm314_vm3, %v716_v20  ;;  %v717_v26 = vadd.f32 %v1063_v25, %v596_v19  ;;  %v690_v27 = vpop.f32.mrb[19].mxu0  ;;  %v743_v37 = vld [vmem:[#allocation4 + $0x40] sm:$0xff] }
 0x39d   : > { %730 = vst.msk [vmem:[#allocation4 + $0x60] sm:$0xff] %vm314_vm3, %v714_v24  ;;  %v715_v31 = vadd.f32 %v690_v27, %v594_v22  ;;  %v746_v40 = vld [vmem:[#allocation4 + $0x58] sm:$0xff] }
 0x39e   : > { %733 = vst.msk [vmem:[#allocation4 + $0x78] sm:$0xff] %vm314_vm3, %v717_v26  ;;  %v744_v36 = vld [vmem:[#allocation4 + $0x48] sm:$0xff]  ;;  %v756_v42 = vpack.c.bf16 %v746_v40, %v745_v41 }
 0x39f   : > { %731 = vst.msk [vmem:[#allocation4 + $0x68] sm:$0xff] %vm314_vm3, %v715_v31  ;;  %v755_v38 = vpack.c.bf16 %v744_v36, %v743_v37 }
 0x3a0   : > { %v778_v43 = vsel %vm314_vm3, %v756_v42, 0 }
 0x3a1   : > { %v775_v39 = vsel %vm314_vm3, %v755_v38, 0 }
 0x3a2   : > { %1069 = vmatpush3.bf16.xpose.msra.mxu1 %v769_v29 }
 0x3a3   : > { %1070 = vmatprep.subr.bf16.mxu1 %v1227_v0  ;;  %v749_v49 = vld [vmem:[#allocation4 + $0x70] sm:$0xff] }
 0x3a4   : > { %v747_v45 = vld [vmem:[#allocation4 + $0x60] sm:$0xff] }
 0x3a5   : > { %v750_v48 = vld [vmem:[#allocation4 + $0x78] sm:$0xff] }
 0x3a6   : > { %v748_v44 = vld [vmem:[#allocation4 + $0x68] sm:$0xff]  ;;  %v758_v50 = vpack.c.bf16 %v750_v48, %v749_v49 }
 0x3a7   : > { %v757_v46 = vpack.c.bf16 %v748_v44, %v747_v45 }
 0x3a8   : > { %v784_v51 = vsel %vm314_vm3, %v758_v50, 0 }
 0x3a9   : > { %v781_v47 = vsel %vm314_vm3, %v757_v46, 0 }
 0x3aa   : > { %1071 = vmatpush3.bf16.xpose.msra.mxu1 %v772_v35 }
 0x3ab   : > { %1072 = vmatprep.subr.bf16.mxu1 %v1227_v0 }
 0x3b2   : > { %1073 = vmatpush3.bf16.xpose.msra.mxu1 %v775_v39 }
 0x3b3   : > { %1074 = vmatprep.subr.bf16.mxu1 %v1227_v0 }
 0x3ba   : > { %1075 = vmatpush3.bf16.xpose.msra.mxu1 %v778_v43 }
 0x3bb   : > { %1076 = vmatprep.subr.bf16.mxu1 %v1227_v0 }
 0x3c2   : > { %1077 = vmatpush3.bf16.xpose.msra.mxu1 %v781_v47 }
 0x3c3   : > { %1078 = vmatprep.subr.bf16.mxu1 %v1227_v0 }
 0x3ca   : > { %1079 = vmatpush3.bf16.xpose.msra.mxu1 %v784_v51 }
 0x3d1   : > { %1081 = vmatmul.mubr.msk.bf16.vlgmr.msra.gmra.mrb[16].mxu1 %vm314_vm3, %v734_v52 }
 0x4a4   : > { %v820_v53 = vpop.f32.mrb[16].mxu1 }
 0x4a5   : > { %827 = vadd.xlane.f32.xlu0 %v820_v53  ;;  %v1082_v54 = vpop.f32.mrb[17].mxu1  ;;  %v831_v55 = vmul.f32 %v820_v53, %v820_v53  ;;  %826 = vst [vmem:[%s216_s16] sm:$0xff] %v820_v53 }
 0x4a6   : > { %v823_v0 = vpop.f32.mrb[18].mxu1 }
 0x4a7   : > { %832 = vadd.xlane.f32.xlu1 %v831_v55  ;;  %v1083_v56 = vpop.f32.mrb[19].mxu1 }
 0x4a8   : > { %1176 = shalt.err (!%p1173_p3)
}
 0x4a9   : > { %s1177_s22 = scalar_lea.hbm %s1430_s26, 128  ;;  %s1181_s14 = scalar_lea.hbm %s1477_s3, 256 }
 0x4aa   : > { %p1178_p4 = scmp.ne.s32.totalorder %s1430_s26, %s1177_s22  ;;  %p1182_p9 = scmp.lt.u32.totalorder %s1430_s26, %s1477_s3 }
 0x4ab   : > { %p1183_p10 = scmp.lt.u32.totalorder %s1181_s14, %s1177_s22  ;;  %p1185_p12 = scmp.lt.u32.totalorder %s1177_s22, %s1430_s26 }
 0x4ac   : > { %p1179_p7 = pnand %p1178_p4, %p1299_p5 }
 0x4ad   : > { %p1184_p11 = por %p1183_p10, %p1182_p9 }
 0x4ae   : > { %p1180_p8 = pneg %p1179_p7 }
 0x4af   : > { %p1186_p13 = por %p1185_p12, %p1184_p11 }
 0x4b1   : > { %p1187_p0 = pnand %p1186_p13, %p1180_p8 }
 0x4b3   : > { %1190 = shalt.err (!%p1187_p0)
}
 0x4b4   : > { %1085 = dma.vmem_to_hbm [thread:$0]  (%p1299_p5), %s858_s30, 128, %s1430_s26, %s836_s7   ;;  %vm829_vm5 = vcmask 7168  }
 0x4b5   : > { %s236_s25 = scalar_lea.vmem %s1478_s4, %s1314_s6  ;;  %s240_s10 = scalar_lea.vmem %s1479_s5, %s1314_s6 }
 0x532   : > { %v828_v57 = vpop.xlane.xlu0 %827 }
 0x533   : > { %830 = vst.msk [vmem:[%s236_s25] sm:$0xff] %vm829_vm5, %v828_v57 }
 0x534   : > { %v833_v58 = vpop.xlane.xlu1 %832 }
 0x535   : > { %834 = vst.msk [vmem:[%s240_s10] sm:$0xff] %vm829_vm5, %v833_v58 }
 0x536 PF: > { %p1091_p1 = scmp.ge.s32.totalorder %s1225_s21, 2  ;;  %s875_s28 = sand.u32 1, %s1213_s18  }
 0x537   : > { %s876_s26 = scalar_lea.sflag [#allocation6], %s875_s28 }
 0x538   : > { %p1088_p5 = pnand %p1091_p1, %p1303_p6 }
 0x53a   : > { %1208 = dma.done.wait (!%p1088_p5), %s876_s26, 128  }
 0x53b   : > { %1210 = vsyncadd (!%p1088_p5), %s876_s26, 4294967168  ;;  %p16_p2 = scmp.ge.s32.totalorder %s1286_s24, 4   ;;  %s1482_s18 = smov %s1217_s19 }
 0x53c   : > { %s1483_s19 = smov %s1221_s20  ;;  %s1484_s20 = smov %s1297_s27 }
 0x53d   : > { %s1485_s21 = smov %s1286_s24  ;;  %18 = sbr.rel (!%p16_p2) target bundleno = 3 (0x3), region = 91 }
 0x544   :  { %895 = vsyncpa [#allocation6], 1 }
 0x545   :  { %897 = vsyncpa [#allocation6 + $0x1], 1 }

</bundles_post_ra>
